<compile_context>
chip_gen: v7x
topology: tpu7x:2x2x1
jax: 0.10.0
libtpu: 0.0.40
codegen_flags: <defaults>
</compile_context>

<pallas_src>
import jax
import jax.numpy as jnp
from jax.experimental import pallas as pl
from jax.experimental.pallas import tpu as pltpu

_TARGET_BLOCK_BYTES = 2 * 1024 * 1024   # ~2 MiB output block per grid step
_BYPASS_BYTES = 1 * 1024 * 1024         # below this, launch overhead > data movement


def _broadcast_const_kernel(c_ref, o_ref):
    # c_ref: (1, L)  constant row, resident in VMEM (constant index_map -> fetched once)
    # o_ref: (TB, L) lane-dense output slab holding TB batch replicas
    o_ref[...] = jnp.broadcast_to(c_ref[...], o_ref.shape)


def _pick_tb(n, row_bytes):
    """Choose TB (batch replicas per grid step)."""
    tb = max(1, _TARGET_BLOCK_BYTES // max(1, row_bytes))
    tb = min(tb, n)
    if tb < n:
        # Sublane-aligned blocks when not covering the whole batch in one step.
        tb = min(n, max(8, (tb // 8) * 8))
    elif n >= 16:
        # Keep >= 2 grid steps so v7x's two TensorCores both get writeback work.
        tb = min(n, ((pl.cdiv(n, 2) + 7) // 8) * 8)
    return tb


def constant_net_forward(x, c, *, force_pallas=False):
    """Contant_net.forward: return c broadcast to (x.shape[0],) + c.shape."""
    n = x.shape[0]
    c_shape = c.shape
    itemsize = jnp.dtype(c.dtype).itemsize
    total_bytes = n * max(1, c.size) * itemsize

    # Tiny outputs: multi-microsecond kernel launch dwarfs the few KiB of data
    # movement, and XLA's broadcast can stay lazy / fuse into the consumer.
    if total_bytes < _BYPASS_BYTES and not force_pallas:
        return jnp.broadcast_to(c, (n,) + c_shape)

    # Flatten c to one lane-dense row of length L = c.size; the output becomes a
    # plain (N, L) slab so every store is wide and fully dense regardless of c's
    # original last-dim size.
    L = max(1, c.size)
    c2 = c.reshape(1, L)
    row_bytes = L * itemsize
    tb = _pick_tb(n, row_bytes)
    grid = (pl.cdiv(n, tb),)

    y2 = pl.pallas_call(
        _broadcast_const_kernel,
        out_shape=jax.ShapeDtypeStruct((n, L), c.dtype),
        grid_spec=pltpu.PrefetchScalarGridSpec(
            num_scalar_prefetch=0,
            grid=grid,
            # Constant index_map -> c's VMEM tile fetched from HBM exactly once.
            in_specs=[pl.BlockSpec((1, L), lambda i: (0, 0))],
            # TB batch replicas per ~2 MiB lane-dense output block.
            out_specs=pl.BlockSpec((tb, L), lambda i: (i, 0)),
        ),
        compiler_params=pltpu.CompilerParams(
            dimension_semantics=("parallel",),  # shard batch blocks across TCs (v7x)
        ),
    )(c2)
    return y2.reshape((n,) + c_shape)


def constant_net_reference(x, c):
    """Pure-JAX reference for correctness checking."""
    return jnp.broadcast_to(c, (x.shape[0],) + c.shape)


if __name__ == "__main__":
    # Module config: Contant_net(c) with a 2-D constant; x only supplies batch size.
    N, Cin, H, W = 2, 4, 16, 16
    R, D = 8, 128

    key = jax.random.PRNGKey(0)
    kx, kc = jax.random.split(key, 2)
    x = jax.random.normal(kx, (N, Cin, H, W), dtype=jnp.float32)
    c = jax.random.normal(kc, (R, D), dtype=jnp.float32)

    # Force the Pallas path so the kernel itself is exercised at this small size.
    y = jax.block_until_ready(constant_net_forward(x, c, force_pallas=True))
    y_ref = jax.block_until_ready(constant_net_reference(x, c))

    assert y.shape == (N, R, D), y.shape
    assert y.dtype == c.dtype
    assert jnp.array_equal(y, y_ref), "Pallas path mismatch vs broadcast_to reference"

    # Default dispatch (small-N bypass) must also match.
    y_fast = jax.block_until_ready(constant_net_forward(x, c))
    assert jnp.array_equal(y_fast, y_ref), "bypass path mismatch vs reference"

    print("KERNEL_OK")
</pallas_src>

<mosaic_0001>
module attributes {stable_mosaic.version = 11 : i64} {
  func.func @_broadcast_const_kernel(%arg0: i32, %arg1: memref<1x1024xf32, #tpu.memory_space<vmem>>, %arg2: memref<2x1024xf32, #tpu.memory_space<vmem>>) attributes {dimension_semantics = [#tpu.dimension_semantics<parallel>], iteration_bounds = array<i64: 1>, scalar_prefetch = 0 : i64, scratch_operands = 0 : i64, tpu.core_type = #tpu.core_type<tc>, window_params = [{pipeline_mode = #tpu.pipeline_mode<synchronous>, transform_indices = @transform_0, window_bounds = array<i64: 1, 1024>}, {transform_indices = @transform_1, window_bounds = array<i64: 2, 1024>}]} {
    %c0 = arith.constant 0 : index
    %c0_0 = arith.constant 0 : index
    %0 = vector.load %arg1[%c0, %c0_0] : memref<1x1024xf32, #tpu.memory_space<vmem>>, vector<1x1024xf32>
    %1 = vector.shape_cast %0 : vector<1x1024xf32> to vector<1x1024xf32>
    %2 = vector.broadcast %1 : vector<1x1024xf32> to vector<2x1024xf32>
    %c0_1 = arith.constant 0 : index
    %c0_2 = arith.constant 0 : index
    %3 = vector.load %arg2[%c0_1, %c0_2] : memref<2x1024xf32, #tpu.memory_space<vmem>>, vector<2x1024xf32>
    tpu.vector_store %arg2[%c0_1, %c0_2], %2 {strides = array<i32>} : memref<2x1024xf32, #tpu.memory_space<vmem>>, vector<2x1024xf32>,
    return
  }
  func.func @transform_0(%arg0: i32) -> (i32, i32) {
    %c0_i32 = arith.constant 0 : i32
    %c0_i32_0 = arith.constant 0 : i32
    %c0_i32_1 = arith.constant 0 : i32
    return %c0_i32, %c0_i32_0 : i32, i32
  }
  func.func @transform_1(%arg0: i32) -> (i32, i32) {
    %c0_i32 = arith.constant 0 : i32
    %c0_i32_0 = arith.constant 0 : i32
    return %arg0, %c0_i32 : i32, i32
  }
}

</mosaic_0001>

<bundles_post_ra>
// kernel: tpu_custom_call.1
= control target key start
LH: loop header
LB: loop body
LE: loop exit
PB: predicated region body
PF: predicated region fallthrough
CT: control target
= control target key end

     0   :  { %6 = vsyncpa [#allocation3], 0  ;;  %s196_s0 = inlined_call_operand.hbm [shape: f32[1,1024], index: 0, kind: input, shape index: {}]   ;;  %s197_s1 = inlined_call_operand.hbm [shape: f32[2,1024], index: 1, kind: output, shape index: {}]  }
   0x1   :  { %7 = vsyncpa [#allocation4], 0  ;;  %s159_s6 = smov [#allocation2]   ;;  %s111_s10 = scalar_lea.hbm %s196_s0, 128 }
   0x2   :  { %s14_s7 = sshll.u32 %s159_s6, 4  ;;  %p112_p0 = scmp.ne.s32.totalorder %s196_s0, %s111_s10  ;;  %s15_s7 = int_to_ptr.vmem [resolvable:$true] %s14_s7 }
   0x3   :  { %p115_p1 = scmp.lt.u32.totalorder %s111_s10, %s196_s0 }
   0x5   :  { %p117_p2 = pnand %p115_p1, %p112_p0 }
   0x7   :  { %120 = shalt.err (!%p117_p2)
}
   0x8   :  { %s121_s15 = scalar_lea.vmem %s15_s7, 128  ;;  %p126_p4 = scmp.lt.s32.totalorder %s15_s7, %s15_s7 }
   0x9   :  { %p122_p3 = scmp.ne.s32.totalorder %s15_s7, %s121_s15  ;;  %p127_p5 = scmp.lt.s32.totalorder %s121_s15, %s121_s15 }
   0xb   :  { %p128_p6 = por %p127_p5, %p126_p4 }
   0xd   :  { %p129_p7 = pnand %p128_p6, %p122_p3 }
   0xf   :  { %132 = shalt.err (!%p129_p7)
}
  0x10   :  { %17 = dma.hbm_to_vmem [thread:$0]  %s196_s0, 128, %s15_s7, [#allocation3]  }
  0x11   :  { %155 = dma.done.wait [#allocation3], 128  }
  0x12   :  { %156 = vsyncadd [#allocation3], 4294967168  ;;  %v23_v0 = vlaneseq  ;;  %v160_v1 = vmov 1983009808   ;;  %v21_v13 = vld [vmem:[#allocation2] sm:$0xff]  ;;  %s161_s0 = smov [#allocation5]  }
  0x13   :  { %v58_v2 = vunpack.c.l.s4 %v160_v1  ;;  %s99_s18 = sshll.u32 %s161_s0, 4  ;;  %s100_s18 = int_to_ptr.vmem [resolvable:$true] %s99_s18 }
  0x14   :  { %v24_v3 = vshrl.u32 %v23_v0, 7  ;;  %s133_s19 = scalar_lea.vmem %s100_s18, 256  ;;  %p138_p9 = scmp.lt.s32.totalorder %s100_s18, %s100_s18 }
  0x15   :  { %v59_v4 = vunpack.c.0.s8 %v58_v2  ;;  %p134_p8 = scmp.ne.s32.totalorder %s100_s18, %s133_s19  ;;  %p139_p10 = scmp.lt.s32.totalorder %s133_s19, %s133_s19 }
  0x16   :  { %v25_v5 = vsub.s32 0, %v24_v3  ;;  %v29_v6 = vsub.s32 1, %v24_v3  ;;  %v33_v7 = vsub.s32 2, %v24_v3  ;;  %v37_v8 = vsub.s32 3, %v24_v3 }
  0x17   :  { %v41_v9 = vsub.s32 4, %v24_v3  ;;  %v45_v10 = vsub.s32 5, %v24_v3  ;;  %v49_v11 = vsub.s32 6, %v24_v3  ;;  %v53_v12 = vsub.s32 7, %v24_v3  ;;  %p140_p11 = por %p139_p10, %p138_p9 }
  0x18   :  { %v62_v14 = vsub.s32 %v59_v4, %v24_v3  ;;  %v26_v15 = vrot.slane %v21_v13, %v25_v5  ;;  %v30_v16 = vrot.slane %v21_v13, %v29_v6  ;;  %v34_v17 = vrot.slane %v21_v13, %v33_v7 }
  0x19   :  { %v38_v18 = vrot.slane %v21_v13, %v37_v8  ;;  %v42_v19 = vrot.slane %v21_v13, %v41_v9  ;;  %v46_v20 = vrot.slane %v21_v13, %v45_v10  ;;  %v50_v21 = vrot.slane %v21_v13, %v49_v11  ;;  %p141_p12 = pnand %p140_p11, %p134_p8 }
  0x1a   :  { %v54_v22 = vrot.slane %v21_v13, %v53_v12  ;;  %v55_v23 = vcombine.low %v26_v15, %v30_v16 }
  0x1b   :  { %v56_v24 = vcombine.low %v34_v17, %v38_v18  ;;  %v72_v25 = vcombine.low %v42_v19, %v46_v20 }
  0x1c   :  { %v73_v26 = vcombine.low %v50_v21, %v54_v22  ;;  %v63_v27 = vrot.slane %v55_v23, %v62_v14 }
  0x1d   :  { %v70_v28 = vrot.slane %v56_v24, %v62_v14  ;;  %v80_v29 = vrot.slane %v72_v25, %v62_v14 }
  0x1e   :  { %v87_v30 = vrot.slane %v73_v26, %v62_v14 }
  0x1f   :  { %v71_v31 = vcombine.low %v63_v27, %v70_v28 }
  0x20   :  { %v88_v32 = vcombine.low %v80_v29, %v87_v30 }
  0x21   :  { %91 = vst [vmem:[#allocation5] sm:$0xff] %v71_v31 }
  0x22   :  { %92 = vst [vmem:[#allocation5 + $0x8] sm:$0xff] %v88_v32 }
  0x23   :  { %144 = shalt.err (!%p141_p12)
}
  0x24   :  { %s145_s22 = scalar_lea.hbm %s197_s1, 256 }
  0x25   :  { %p146_p13 = scmp.ne.s32.totalorder %s197_s1, %s145_s22  ;;  %p149_p0 = scmp.lt.u32.totalorder %s145_s22, %s197_s1 }
  0x27   :  { %p151_p1 = pnand %p149_p0, %p146_p13 }
  0x29   :  { %154 = shalt.err (!%p151_p1)
}
  0x2a   :  { %102 = dma.vmem_to_hbm [thread:$0]  %s100_s18, 256, %s197_s1, [#allocation4]  }
  0x2b   :  { %157 = dma.done.wait [#allocation4], 256  }
  0x2c   :  { %158 = vsyncadd [#allocation4], 4294967040 }
  0x2d   :  { %106 = vsyncpa [#allocation3], 1 }
  0x2e   :  { %107 = vsyncpa [#allocation4], 1 }

</bundles_post_ra>
